<compile_context>
chip_gen: v5e
topology: v5e:2x2
jax: 0.10.0
libtpu: 0.0.40
codegen_flags: <defaults>
</compile_context>

<pallas_src>
import functools

import numpy as np
import jax
import jax.numpy as jnp
from jax import lax
from jax.experimental import pallas as pl
from jax.experimental.pallas import tpu as pltpu

_LANE_PAD = 128  # left/right zero pad of the flat slab (>= max tap shift, 128-aligned)


def _conv_bn_kernel(x_ref, w2_ref, mask_ref, gamma_ref, beta_ref, out_ref,
                    *, n, h, w, cin):
    """One Cout tile: 3x3 conv (single K=9*Cin matmul) + batch-stat BatchNorm.

    x_ref    : (N, Cin, H*W)   activations, lane-dense spatial axis
    w2_ref   : (ct, 9*Cin)     weights for this tile, tap-major / ci-minor
    mask_ref : (9, N*H*W)      0/1 SAME-padding masks, one row per tap
    gamma_ref, beta_ref : (ct, 1)
    out_ref  : (N, ct, H*W)
    """
    hw = h * w
    l = n * hw

    # Lane-dense channel-major slab: (Cin, pad | sample0 | sample1 | ... | pad).
    # Sample offsets are 128-aligned, so this is a clean lane concatenation.
    zpad = jnp.zeros((cin, _LANE_PAD), dtype=jnp.float32)
    xs_pad = jnp.concatenate(
        [zpad] + [x_ref[i] for i in range(n)] + [zpad], axis=1)  # (Cin, L+2*pad)

    # im2col: 9 shifted lane windows of the slab, masked for SAME padding,
    # stacked into a single (9*Cin, L) matrix.  Any shift that crosses a row /
    # sample boundary is zeroed by the mask, so no per-tap relayout of a 4-D
    # strided window is ever needed.
    pieces = []
    for dy in (-1, 0, 1):
        for dx in (-1, 0, 1):
            t = (dy + 1) * 3 + (dx + 1)          # tap index, matches W2 layout
            d = dy * w + dx                      # flat lane shift of this tap
            shifted = xs_pad[:, _LANE_PAD + d:_LANE_PAD + d + l]   # (Cin, L)
            m = mask_ref[t].reshape(1, l)        # 0/1 padding mask for this tap
            pieces.append(shifted * m)
    x2 = jnp.concatenate(pieces, axis=0)         # (9*Cin, L)

    # 3x3 conv == one MXU matmul with f32 accumulation.  The conv bias is
    # omitted: it is cancelled exactly by the batch-mean subtraction below.
    acc = jnp.dot(w2_ref[...], x2, preferred_element_type=jnp.float32)  # (ct, L)

    # BatchNorm2d with batch statistics, single pass (sum / sum-of-squares).
    inv_count = 1.0 / l
    s = jnp.sum(acc, axis=1, keepdims=True)          # (ct, 1)
    sq = jnp.sum(acc * acc, axis=1, keepdims=True)   # (ct, 1)
    mean = s * inv_count
    var = sq * inv_count - mean * mean               # biased variance (PyTorch fwd)
    inv_std = lax.rsqrt(var + 1e-5)
    scale = gamma_ref[...] * inv_std                 # (ct, 1)
    shift = beta_ref[...] - mean * scale             # (ct, 1)
    y = acc * scale + shift                          # (ct, L), lane-dense

    # Emit NCHW-compatible output: per-sample 128-aligned lane slices.
    for i in range(n):
        out_ref[i] = y[:, i * hw:(i + 1) * hw].astype(out_ref.dtype)


def _tap_masks(n, h, w):
    """0/1 masks realizing SAME zero-padding for each of the 9 conv taps."""
    hw = h * w
    q = np.arange(n * hw)
    r = (q % hw) // w
    c = q % w
    rows = []
    for dy in (-1, 0, 1):
        for dx in (-1, 0, 1):
            ok = (r + dy >= 0) & (r + dy < h) & (c + dx >= 0) & (c + dx < w)
            rows.append(ok)
    return np.stack(rows).astype(np.float32)         # (9, N*H*W)


@jax.jit
def conv_only_block_forward(x_nchw, w_oihw, bias, gamma, beta):
    """Pallas forward of _conv_only_block (Conv2d 3x3/s1/p1 + BatchNorm2d).

    x_nchw : (N, Cin, H, W) f32      w_oihw : (Cout, Cin, 3, 3) f32
    bias   : (Cout,) f32  -- unused: cancelled exactly by batch-statistics BN
    gamma, beta : (Cout,) f32
    returns (N, Cout, H, W) f32
    """
    # NOTE: `bias` is intentionally not used (batch-mean subtraction cancels a
    # per-channel constant).  If this block is ever run with eval-mode BN
    # (running stats), fold the bias back in (e.g. into beta).
    n, cin, h, w = x_nchw.shape
    cout = w_oihw.shape[0]
    hw = h * w

    # Free row-major reshapes only — no transpose / pad at the XLA level.
    x2d = x_nchw.reshape(n, cin, hw)
    # Weights -> (Cout, 9*Cin), tap-major / ci-minor (matches X2 row order).
    w2 = jnp.transpose(w_oihw, (0, 2, 3, 1)).reshape(cout, 9 * cin)
    masks = jnp.asarray(_tap_masks(n, h, w))         # baked compile-time constant

    # Grid over output-channel tiles.  BN stats are per-channel, so every tile
    # is fully independent -> "parallel" (uses both TensorCores on v7x).
    ct = cout if cout <= 256 else 256
    assert cout % ct == 0
    grid = (cout // ct,)

    kernel = functools.partial(_conv_bn_kernel, n=n, h=h, w=w, cin=cin)
    out = pl.pallas_call(
        kernel,
        out_shape=jax.ShapeDtypeStruct((n, cout, hw), jnp.float32),
        grid=grid,
        in_specs=[
            pl.BlockSpec((n, cin, hw), lambda j: (0, 0, 0)),      # activations
            pl.BlockSpec((ct, 9 * cin), lambda j: (j, 0)),        # weights
            pl.BlockSpec((9, n * hw), lambda j: (0, 0)),          # pad masks
            pl.BlockSpec((ct, 1), lambda j: (j, 0)),              # gamma
            pl.BlockSpec((ct, 1), lambda j: (j, 0)),              # beta
        ],
        out_specs=pl.BlockSpec((n, ct, hw), lambda j: (0, j, 0)),
        compiler_params=pltpu.CompilerParams(
            dimension_semantics=("parallel",)),
    )(x2d, w2, masks, gamma.reshape(cout, 1), beta.reshape(cout, 1))

    # Free reshape back to NCHW.
    return out.reshape(n, cout, h, w)


def _reference_forward(x_nchw, w_oihw, bias, gamma, beta):
    """Pure-JAX reference (lax.conv + batch-statistics BN) for correctness."""
    conv = lax.conv_general_dilated(
        x_nchw, w_oihw, window_strides=(1, 1), padding="SAME",
        dimension_numbers=("NCHW", "OIHW", "NCHW"),
    ) + bias[None, :, None, None]
    mean = conv.mean(axis=(0, 2, 3), keepdims=True)
    var = conv.var(axis=(0, 2, 3), keepdims=True)   # biased, like PyTorch BN fwd
    return (conv - mean) / jnp.sqrt(var + 1e-5) * gamma[None, :, None, None] \
        + beta[None, :, None, None]


if __name__ == "__main__":
    # channel = (Cin, Cout) = (4, 8); small spatial size.
    N, Cin, Cout, H, W = 2, 4, 8, 16, 16

    key = jax.random.PRNGKey(0)
    kx, kw, kb = jax.random.split(key, 3)

    x = jax.random.normal(kx, (N, Cin, H, W), dtype=jnp.float32)
    w_oihw = jax.random.normal(kw, (Cout, Cin, 3, 3), dtype=jnp.float32) * 0.1
    bias = jax.random.normal(kb, (Cout,), dtype=jnp.float32) * 0.1   # Conv2d.bias
    gamma = jnp.ones((Cout,), dtype=jnp.float32)    # BatchNorm2d.weight (fresh init)
    beta = jnp.zeros((Cout,), dtype=jnp.float32)    # BatchNorm2d.bias

    out = conv_only_block_forward(x, w_oihw, bias, gamma, beta)
    out = jax.block_until_ready(out)

    ref = _reference_forward(x, w_oihw, bias, gamma, beta)
    assert out.shape == (N, Cout, H, W)
    assert jnp.allclose(out, ref, atol=1e-4, rtol=1e-4), "mismatch vs reference"

    print("KERNEL_OK")
</pallas_src>

<mosaic_0001>
module attributes {stable_mosaic.version = 11 : i64} {
  func.func @_conv_bn_kernel(%arg0: i32, %arg1: memref<2x4x256xf32, #tpu.memory_space<vmem>>, %arg2: memref<8x36xf32, #tpu.memory_space<vmem>>, %arg3: memref<9x512xf32, #tpu.memory_space<vmem>>, %arg4: memref<8x1xf32, #tpu.memory_space<vmem>>, %arg5: memref<8x1xf32, #tpu.memory_space<vmem>>, %arg6: memref<2x8x256xf32, #tpu.memory_space<vmem>>) attributes {dimension_semantics = [#tpu.dimension_semantics<parallel>], iteration_bounds = array<i64: 1>, scalar_prefetch = 0 : i64, scratch_operands = 0 : i64, tpu.core_type = #tpu.core_type<tc>, window_params = [{pipeline_mode = #tpu.pipeline_mode<synchronous>, transform_indices = @transform_0, window_bounds = array<i64: 2, 4, 256>}, {transform_indices = @transform_1, window_bounds = array<i64: 8, 36>}, {pipeline_mode = #tpu.pipeline_mode<synchronous>, transform_indices = @transform_2, window_bounds = array<i64: 9, 512>}, {transform_indices = @transform_3, window_bounds = array<i64: 8, 1>}, {transform_indices = @transform_4, window_bounds = array<i64: 8, 1>}, {transform_indices = @transform_5, window_bounds = array<i64: 2, 8, 256>}]} {
    %cst = arith.constant 0.000000e+00 : f32
    %0 = vector.broadcast %cst : f32 to vector<4x128xf32>
    %c0 = arith.constant 0 : index
    %c0_0 = arith.constant 0 : index
    %c0_1 = arith.constant 0 : index
    %1 = vector.load %arg1[%c0, %c0_0, %c0_1] : memref<2x4x256xf32, #tpu.memory_space<vmem>>, vector<1x4x256xf32>
    %2 = vector.shape_cast %1 : vector<1x4x256xf32> to vector<4x256xf32>
    %c1 = arith.constant 1 : index
    %c0_2 = arith.constant 0 : index
    %c0_3 = arith.constant 0 : index
    %3 = vector.load %arg1[%c1, %c0_2, %c0_3] : memref<2x4x256xf32, #tpu.memory_space<vmem>>, vector<1x4x256xf32>
    %4 = vector.shape_cast %3 : vector<1x4x256xf32> to vector<4x256xf32>
    %5 = tpu.concatenate %0, %2, %4, %0 in 1 : vector<4x128xf32>, vector<4x256xf32>, vector<4x256xf32>, vector<4x128xf32> -> vector<4x768xf32>
    %6 = vector.extract_strided_slice %5 {offsets = [0, 111], sizes = [4, 512], strides = [1, 1]} : vector<4x768xf32> to vector<4x512xf32>
    %c0_4 = arith.constant 0 : index
    %c0_5 = arith.constant 0 : index
    %7 = vector.load %arg3[%c0_4, %c0_5] : memref<9x512xf32, #tpu.memory_space<vmem>>, vector<1x512xf32>
    %8 = vector.shape_cast %7 : vector<1x512xf32> to vector<512xf32>
    %9 = vector.shape_cast %8 : vector<512xf32> to vector<1x512xf32>
    %10 = vector.broadcast %9 : vector<1x512xf32> to vector<4x512xf32>
    %11 = arith.mulf %6, %10 : vector<4x512xf32>
    %12 = vector.extract_strided_slice %5 {offsets = [0, 112], sizes = [4, 512], strides = [1, 1]} : vector<4x768xf32> to vector<4x512xf32>
    %c1_6 = arith.constant 1 : index
    %c0_7 = arith.constant 0 : index
    %13 = vector.load %arg3[%c1_6, %c0_7] : memref<9x512xf32, #tpu.memory_space<vmem>>, vector<1x512xf32>
    %14 = vector.shape_cast %13 : vector<1x512xf32> to vector<512xf32>
    %15 = vector.shape_cast %14 : vector<512xf32> to vector<1x512xf32>
    %16 = vector.broadcast %15 : vector<1x512xf32> to vector<4x512xf32>
    %17 = arith.mulf %12, %16 : vector<4x512xf32>
    %18 = vector.extract_strided_slice %5 {offsets = [0, 113], sizes = [4, 512], strides = [1, 1]} : vector<4x768xf32> to vector<4x512xf32>
    %c2 = arith.constant 2 : index
    %c0_8 = arith.constant 0 : index
    %19 = vector.load %arg3[%c2, %c0_8] : memref<9x512xf32, #tpu.memory_space<vmem>>, vector<1x512xf32>
    %20 = vector.shape_cast %19 : vector<1x512xf32> to vector<512xf32>
    %21 = vector.shape_cast %20 : vector<512xf32> to vector<1x512xf32>
    %22 = vector.broadcast %21 : vector<1x512xf32> to vector<4x512xf32>
    %23 = arith.mulf %18, %22 : vector<4x512xf32>
    %24 = vector.extract_strided_slice %5 {offsets = [0, 127], sizes = [4, 512], strides = [1, 1]} : vector<4x768xf32> to vector<4x512xf32>
    %c3 = arith.constant 3 : index
    %c0_9 = arith.constant 0 : index
    %25 = vector.load %arg3[%c3, %c0_9] : memref<9x512xf32, #tpu.memory_space<vmem>>, vector<1x512xf32>
    %26 = vector.shape_cast %25 : vector<1x512xf32> to vector<512xf32>
    %27 = vector.shape_cast %26 : vector<512xf32> to vector<1x512xf32>
    %28 = vector.broadcast %27 : vector<1x512xf32> to vector<4x512xf32>
    %29 = arith.mulf %24, %28 : vector<4x512xf32>
    %30 = vector.extract_strided_slice %5 {offsets = [0, 128], sizes = [4, 512], strides = [1, 1]} : vector<4x768xf32> to vector<4x512xf32>
    %c4 = arith.constant 4 : index
    %c0_10 = arith.constant 0 : index
    %31 = vector.load %arg3[%c4, %c0_10] : memref<9x512xf32, #tpu.memory_space<vmem>>, vector<1x512xf32>
    %32 = vector.shape_cast %31 : vector<1x512xf32> to vector<512xf32>
    %33 = vector.shape_cast %32 : vector<512xf32> to vector<1x512xf32>
    %34 = vector.broadcast %33 : vector<1x512xf32> to vector<4x512xf32>
    %35 = arith.mulf %30, %34 : vector<4x512xf32>
    %36 = vector.extract_strided_slice %5 {offsets = [0, 129], sizes = [4, 512], strides = [1, 1]} : vector<4x768xf32> to vector<4x512xf32>
    %c5 = arith.constant 5 : index
    %c0_11 = arith.constant 0 : index
    %37 = vector.load %arg3[%c5, %c0_11] : memref<9x512xf32, #tpu.memory_space<vmem>>, vector<1x512xf32>
    %38 = vector.shape_cast %37 : vector<1x512xf32> to vector<512xf32>
    %39 = vector.shape_cast %38 : vector<512xf32> to vector<1x512xf32>
    %40 = vector.broadcast %39 : vector<1x512xf32> to vector<4x512xf32>
    %41 = arith.mulf %36, %40 : vector<4x512xf32>
    %42 = vector.extract_strided_slice %5 {offsets = [0, 143], sizes = [4, 512], strides = [1, 1]} : vector<4x768xf32> to vector<4x512xf32>
    %c6 = arith.constant 6 : index
    %c0_12 = arith.constant 0 : index
    %43 = vector.load %arg3[%c6, %c0_12] : memref<9x512xf32, #tpu.memory_space<vmem>>, vector<1x512xf32>
    %44 = vector.shape_cast %43 : vector<1x512xf32> to vector<512xf32>
    %45 = vector.shape_cast %44 : vector<512xf32> to vector<1x512xf32>
    %46 = vector.broadcast %45 : vector<1x512xf32> to vector<4x512xf32>
    %47 = arith.mulf %42, %46 : vector<4x512xf32>
    %48 = vector.extract_strided_slice %5 {offsets = [0, 144], sizes = [4, 512], strides = [1, 1]} : vector<4x768xf32> to vector<4x512xf32>
    %c7 = arith.constant 7 : index
    %c0_13 = arith.constant 0 : index
    %49 = vector.load %arg3[%c7, %c0_13] : memref<9x512xf32, #tpu.memory_space<vmem>>, vector<1x512xf32>
    %50 = vector.shape_cast %49 : vector<1x512xf32> to vector<512xf32>
    %51 = vector.shape_cast %50 : vector<512xf32> to vector<1x512xf32>
    %52 = vector.broadcast %51 : vector<1x512xf32> to vector<4x512xf32>
    %53 = arith.mulf %48, %52 : vector<4x512xf32>
    %54 = vector.extract_strided_slice %5 {offsets = [0, 145], sizes = [4, 512], strides = [1, 1]} : vector<4x768xf32> to vector<4x512xf32>
    %c8 = arith.constant 8 : index
    %c0_14 = arith.constant 0 : index
    %55 = vector.load %arg3[%c8, %c0_14] : memref<9x512xf32, #tpu.memory_space<vmem>>, vector<1x512xf32>
    %56 = vector.shape_cast %55 : vector<1x512xf32> to vector<512xf32>
    %57 = vector.shape_cast %56 : vector<512xf32> to vector<1x512xf32>
    %58 = vector.broadcast %57 : vector<1x512xf32> to vector<4x512xf32>
    %59 = arith.mulf %54, %58 : vector<4x512xf32>
    %60 = tpu.concatenate %11, %17, %23, %29, %35, %41, %47, %53, %59 in 0 : vector<4x512xf32>, vector<4x512xf32>, vector<4x512xf32>, vector<4x512xf32>, vector<4x512xf32>, vector<4x512xf32>, vector<4x512xf32>, vector<4x512xf32>, vector<4x512xf32> -> vector<36x512xf32>
    %c0_15 = arith.constant 0 : index
    %c0_16 = arith.constant 0 : index
    %61 = vector.load %arg2[%c0_15, %c0_16] : memref<8x36xf32, #tpu.memory_space<vmem>>, vector<8x36xf32>
    %cst_17 = arith.constant dense<0.000000e+00> : vector<8x512xf32>
    %62 = tpu.matmul %61, %60, %cst_17 {dimension_numbers = #tpu.dot_dimension_numbers<[1], [0], [0], [1], [0, 0, 1, 1], [], []>} : vector<8x36xf32>, vector<36x512xf32>, vector<8x512xf32> -> vector<8x512xf32>
    %cst_18 = arith.constant dense<0.000000e+00> : vector<8xf32>
    %63 = vector.multi_reduction <add>, %62, %cst_18 [1] : vector<8x512xf32> to vector<8xf32>
    %64 = vector.shape_cast %63 : vector<8xf32> to vector<8x1xf32>
    %65 = arith.mulf %62, %62 : vector<8x512xf32>
    %cst_19 = arith.constant dense<0.000000e+00> : vector<8xf32>
    %66 = vector.multi_reduction <add>, %65, %cst_19 [1] : vector<8x512xf32> to vector<8xf32>
    %67 = vector.shape_cast %66 : vector<8xf32> to vector<8x1xf32>
    %cst_20 = arith.constant 0.001953125 : f32
    %68 = vector.broadcast %cst_20 : f32 to vector<8x1xf32>
    %69 = arith.mulf %64, %68 : vector<8x1xf32>
    %cst_21 = arith.constant 0.001953125 : f32
    %70 = vector.broadcast %cst_21 : f32 to vector<8x1xf32>
    %71 = arith.mulf %67, %70 : vector<8x1xf32>
    %72 = arith.mulf %69, %69 : vector<8x1xf32>
    %73 = arith.subf %71, %72 : vector<8x1xf32>
    %cst_22 = arith.constant 9.99999974E-6 : f32
    %74 = vector.broadcast %cst_22 : f32 to vector<8x1xf32>
    %75 = arith.addf %73, %74 : vector<8x1xf32>
    %76 = math.rsqrt %75 : vector<8x1xf32>
    %c0_23 = arith.constant 0 : index
    %c0_24 = arith.constant 0 : index
    %77 = vector.load %arg4[%c0_23, %c0_24] : memref<8x1xf32, #tpu.memory_space<vmem>>, vector<8x1xf32>
    %78 = arith.mulf %77, %76 : vector<8x1xf32>
    %c0_25 = arith.constant 0 : index
    %c0_26 = arith.constant 0 : index
    %79 = vector.load %arg5[%c0_25, %c0_26] : memref<8x1xf32, #tpu.memory_space<vmem>>, vector<8x1xf32>
    %80 = arith.mulf %69, %78 : vector<8x1xf32>
    %81 = arith.subf %79, %80 : vector<8x1xf32>
    %82 = vector.broadcast %78 : vector<8x1xf32> to vector<8x512xf32>
    %83 = arith.mulf %62, %82 : vector<8x512xf32>
    %84 = vector.broadcast %81 : vector<8x1xf32> to vector<8x512xf32>
    %85 = arith.addf %83, %84 : vector<8x512xf32>
    %86 = vector.extract_strided_slice %85 {offsets = [0, 0], sizes = [8, 256], strides = [1, 1]} : vector<8x512xf32> to vector<8x256xf32>
    %c0_27 = arith.constant 0 : index
    %c0_28 = arith.constant 0 : index
    %c0_29 = arith.constant 0 : index
    %87 = vector.load %arg6[%c0_27, %c0_28, %c0_29] : memref<2x8x256xf32, #tpu.memory_space<vmem>>, vector<1x8x256xf32>
    %88 = vector.shape_cast %87 : vector<1x8x256xf32> to vector<8x256xf32>
    %89 = vector.shape_cast %86 : vector<8x256xf32> to vector<1x8x256xf32>
    tpu.vector_store %arg6[%c0_27, %c0_28, %c0_29], %89 {strides = array<i32>} : memref<2x8x256xf32, #tpu.memory_space<vmem>>, vector<1x8x256xf32>,
    %90 = vector.extract_strided_slice %85 {offsets = [0, 256], sizes = [8, 256], strides = [1, 1]} : vector<8x512xf32> to vector<8x256xf32>
    %c1_30 = arith.constant 1 : index
    %c0_31 = arith.constant 0 : index
    %c0_32 = arith.constant 0 : index
    %91 = vector.load %arg6[%c1_30, %c0_31, %c0_32] : memref<2x8x256xf32, #tpu.memory_space<vmem>>, vector<1x8x256xf32>
    %92 = vector.shape_cast %91 : vector<1x8x256xf32> to vector<8x256xf32>
    %93 = vector.shape_cast %90 : vector<8x256xf32> to vector<1x8x256xf32>
    tpu.vector_store %arg6[%c1_30, %c0_31, %c0_32], %93 {strides = array<i32>} : memref<2x8x256xf32, #tpu.memory_space<vmem>>, vector<1x8x256xf32>,
    return
  }
  func.func @transform_0(%arg0: i32) -> (i32, i32, i32) {
    %c0_i32 = arith.constant 0 : i32
    %c0_i32_0 = arith.constant 0 : i32
    %c0_i32_1 = arith.constant 0 : i32
    %c0_i32_2 = arith.constant 0 : i32
    return %c0_i32, %c0_i32_0, %c0_i32_1 : i32, i32, i32
  }
  func.func @transform_1(%arg0: i32) -> (i32, i32) {
    %c0_i32 = arith.constant 0 : i32
    %c0_i32_0 = arith.constant 0 : i32
    return %arg0, %c0_i32 : i32, i32
  }
  func.func @transform_2(%arg0: i32) -> (i32, i32) {
    %c0_i32 = arith.constant 0 : i32
    %c0_i32_0 = arith.constant 0 : i32
    %c0_i32_1 = arith.constant 0 : i32
    return %c0_i32, %c0_i32_0 : i32, i32
  }
  func.func @transform_3(%arg0: i32) -> (i32, i32) {
    %c0_i32 = arith.constant 0 : i32
    %c0_i32_0 = arith.constant 0 : i32
    return %arg0, %c0_i32 : i32, i32
  }
  func.func @transform_4(%arg0: i32) -> (i32, i32) {
    %c0_i32 = arith.constant 0 : i32
    %c0_i32_0 = arith.constant 0 : i32
    return %arg0, %c0_i32 : i32, i32
  }
  func.func @transform_5(%arg0: i32) -> (i32, i32, i32) {
    %c0_i32 = arith.constant 0 : i32
    %c0_i32_0 = arith.constant 0 : i32
    %c0_i32_1 = arith.constant 0 : i32
    return %c0_i32, %arg0, %c0_i32_0 : i32, i32, i32
  }
}

</mosaic_0001>

<bundles_post_ra>
// kernel: conv_only_block_forward.1
= control target key start
LH: loop header
LB: loop body
LE: loop exit
PB: predicated region body
PF: predicated region fallthrough
CT: control target
= control target key end

     0   :  { %s927_s22 = smov 16   ;;  %s928_s23 = smov 17   ;;  %vm267_vm0 = vcmask 138240   ;;  %vm238_vm1 = vcmask 130048   ;;  %vm180_vm2 = vcmask 7168   ;;  %vm209_vm3 = vcmask 121856   ;;  %s1359_s2 = inlined_call_operand.vmem [shape: f32[9,512], index: 2, kind: input, shape index: {}]   ;;  %s1360_s0 = inlined_call_operand.vmem [shape: f32[2,4,256], index: 0, kind: input, shape index: {}]   ;;  %s1361_s1 = inlined_call_operand.vmem [shape: f32[8,36], index: 1, kind: input, shape index: {}]   ;;  %s1362_s3 = inlined_call_operand.vmem [shape: f32[8,1], index: 3, kind: input, shape index: {}]   ;;  %s1363_s4 = inlined_call_operand.vmem [shape: f32[8,1], index: 4, kind: input, shape index: {}]   ;;  %s1364_s5 = inlined_call_operand.vmem [shape: f32[2,8,256], index: 5, kind: output, shape index: {}]  }
   0x1   :  { %v777_v0 = vld [vmem:[%s1359_s2 + $0x7] ss:$8 sm:$0xf]  ;;  %v778_v1 = vld [vmem:[%s1359_s2 + $0x20] ss:$8 sm:$0xf] }
   0x2   :  { %v228_v2 = vperm.slane %v777_v0, 2  ;;  %v226_v3 = vperm.slane %v777_v0, 0  ;;  %v255_v4 = vperm.slane %v778_v1, 0  ;;  %v229_v5 = vperm.slane %v777_v0, 3  ;;  %s929_s26 = smov 1   ;;  %s930_s29 = smov 15  }
   0x3   :  { %v227_v6 = vperm.slane %v777_v0, 1  ;;  %v256_v7 = vperm.slane %v778_v1, 1  ;;  %v258_v8 = vperm.slane %v778_v1, 3  ;;  %v257_v9 = vperm.slane %v778_v1, 2  ;;  %s931_s7 = smov 127   ;;  %v20_v23 = vld [vmem:[%s1360_s0] sm:$0xff] }
   0x4   :  { %234 = vrot.lane.b32.xlu1 %v228_v2, %s927_s22  ;;  %230 = vrot.lane.b32.xlu0 %v226_v3, %s927_s22  ;;  %v775_v10 = vld [vmem:[%s1359_s2 + $0x5] ss:$8 sm:$0xf]  ;;  %v776_v15 = vld [vmem:[%s1359_s2 + $0x6] ss:$8 sm:$0xf] }
   0x5   :  { %259 = vrot.lane.b32.xlu2 %v255_v4, %s928_s23  ;;  %v168_v11 = vperm.slane %v775_v10, 0  ;;  %v170_v12 = vperm.slane %v775_v10, 2  ;;  %v169_v13 = vperm.slane %v775_v10, 1  ;;  %v171_v14 = vperm.slane %v775_v10, 3  ;;  %24 = vst [vmem:[#allocation1] ss:$2 sm:$0xff] %v20_v23 }
   0x6   :  { %v198_v16 = vperm.slane %v776_v15, 1  ;;  %v197_v17 = vperm.slane %v776_v15, 0  ;;  %v199_v18 = vperm.slane %v776_v15, 2  ;;  %v773_v19 = vld [vmem:[%s1359_s2 + $0x3] ss:$8 sm:$0xf] }
   0x7   :  { %v200_v20 = vperm.slane %v776_v15, 3  ;;  %v125_v21 = vperm.slane %v773_v19, 1  ;;  %v126_v22 = vperm.slane %v773_v19, 2  ;;  %v771_v24 = vld [vmem:[%s1359_s2 + $0x1] ss:$8 sm:$0xf] }
   0x8   :  { %v127_v25 = vperm.slane %v773_v19, 3  ;;  %v67_v26 = vperm.slane %v771_v24, 1  ;;  %v68_v27 = vperm.slane %v771_v24, 2  ;;  %v770_v28 = vld [vmem:[%s1360_s0 + $0x8] sm:$0xff]  ;;  %s932_s14 = smov 112   ;;  %v69_v32 = vperm.slane %v771_v24, 3 }
   0x9   :  { %v772_v31 = vld [vmem:[%s1359_s2 + $0x2] ss:$8 sm:$0xf]  ;;  %s933_s0 = smov 113   ;;  %v124_v37 = vperm.slane %v773_v19, 0  ;;  %v66_v40 = vperm.slane %v771_v24, 0 }
   0xa   :  { %v96_v33 = vperm.slane %v772_v31, 1  ;;  %v97_v34 = vperm.slane %v772_v31, 2  ;;  %v774_v35 = vld [vmem:[%s1359_s2 + $0x4] ss:$8 sm:$0xf]  ;;  %v98_v36 = vperm.slane %v772_v31, 3 }
   0xb   :  { %v153_v38 = vperm.slane %v774_v35, 0  ;;  %v156_v39 = vperm.slane %v774_v35, 3  ;;  %v95_v44 = vperm.slane %v772_v31, 0  ;;  %s934_s19 = smov 111   ;;  %v154_v3 = vperm.slane %v774_v35, 1  ;;  %s937_s24 = smov 95  }
   0xc   :  { %236 = vrot.lane.b32.xlu1 %v229_v5, %s927_s22  ;;  %232 = vrot.lane.b32.xlu0 %v227_v6, %s927_s22  ;;  %v1003_v29 = vld.sshfl [vmem:[#allocation1] sm:$0xff pattern:$0x75316420]  ;;  %v1005_v30 = vld.sshfl [vmem:[#allocation1 + $0x8] sm:$0xff pattern:$0x75316420] }
   0xd   :  { %261 = vrot.lane.b32.xlu2 %v256_v7, %s928_s23  ;;  %30 = vst [vmem:[#allocation1] ss:$2 sm:$0xff] %v770_v28  ;;  %v161_v42 = vmul.f32 %v153_v38, %v1003_v29  ;;  %v1025_v46 = vld [vmem:[%s1359_s2] ss:$8 sm:$0xf]  ;;  %s935_s22 = smov 94  }
   0xe   :  { %v40_v47 = vperm.slane %v1025_v46, 3  ;;  %v38_v49 = vperm.slane %v1025_v46, 1  ;;  %v155_v4 = vperm.slane %v774_v35, 2  ;;  %s936_s2 = smov 96   ;;  %vm136_vm4 = vcmask 1039360   ;;  %s938_s25 = smov 126  }
   0xf   :  { %vm107_vm5 = vcmask 924672   ;;  %vm78_vm6 = vcmask 916480   ;;  %vm484_vm7 = vcmask 769024   ;;  %vm489_vm8 = vcmask 1043456  }
  0x10   :  { %vm429_vm9 = vcmask 785408   ;;  %vm459_vm10 = vcmask 777216   ;;  %vm325_vm11 = vcmask 1031168   ;;  %vm404_vm12 = vcmask 900096  }
  0x11   :  { %vm49_vm13 = vcmask 908288   ;;  %vm617_vm14 = vcmask 293888  }
  0x14   :  { %265 = vrot.lane.b32.xlu1 %v258_v8, %s928_s23  ;;  %263 = vrot.lane.b32.xlu0 %v257_v9, %s928_s23  ;;  %v1015_v41 = vld.sshfl [vmem:[#allocation1 + $0x8] sm:$0xff pattern:$0x75316420]  ;;  %v1038_v56 = vld.sshfl [vmem:[#allocation1] sm:$0xff pattern:$0x75316420]  ;;  %v162_v9 = vmul.f32 %v154_v3, %v1005_v30 }
  0x15   :  { %172 = vrot.lane.b32.xlu2 %v168_v11, %s929_s26  ;;  %v164_v43 = vmul.f32 %v156_v39, %v1015_v41  ;;  %v163_v10 = vmul.f32 %v155_v4, %v1038_v56 }
  0x17   :  { %v808_v45 = vpack.i.bf16 %v161_v42, %v164_v43 }
  0x1c   :  { %176 = vrot.lane.b32.xlu1 %v170_v12, %s929_s26  ;;  %174 = vrot.lane.b32.xlu0 %v169_v13, %s929_s26  ;;  %v803_v12 = vpack.i.bf16 %v163_v10, %v162_v9 }
  0x1d   :  { %178 = vrot.lane.b32.xlu2 %v171_v14, %s929_s26  ;;  %s939_s26 = smov 110  }
  0x24   :  { %203 = vrot.lane.b32.xlu1 %v198_v16, %s930_s29  ;;  %201 = vrot.lane.b32.xlu0 %v197_v17, %s930_s29 }
  0x25   :  { %205 = vrot.lane.b32.xlu2 %v199_v18, %s930_s29  ;;  %v39_v18 = vperm.slane %v1025_v46, 2 }
  0x2c   :  { %207 = vrot.lane.b32.xlu0 %v200_v20, %s930_s29  ;;  %130 = vrot.lane.b32.xlu1 %v125_v21, %s931_s7 }
  0x2d   :  { %132 = vrot.lane.b32.xlu2 %v126_v22, %s931_s7 }
  0x34   :  { %134 = vrot.lane.b32.xlu0 %v127_v25, %s931_s7  ;;  %72 = vrot.lane.b32.xlu1 %v67_v26, %s932_s14 }
  0x35   :  { %74 = vrot.lane.b32.xlu2 %v68_v27, %s932_s14 }
  0x3c   :  { %76 = vrot.lane.b32.xlu0 %v69_v32, %s932_s14  ;;  %101 = vrot.lane.b32.xlu1 %v96_v33, %s933_s0 }
  0x3d   :  { %103 = vrot.lane.b32.xlu2 %v97_v34, %s933_s0 }
  0x44   :  { %105 = vrot.lane.b32.xlu0 %v98_v36, %s933_s0  ;;  %128 = vrot.lane.b32.xlu1 %v124_v37, %s931_s7 }
  0x45   :  { %70 = vrot.lane.b32.xlu2 %v66_v40, %s932_s14 }
  0x4c   :  { %99 = vrot.lane.b32.xlu0 %v95_v44, %s933_s0  ;;  %809 = vrot.lane.b32.xlu1 %v808_v45, %s934_s19 }
  0x4d   :  { %43 = vrot.lane.b32.xlu2 %v38_v49, %s934_s19 }
  0x54   :  { %47 = vrot.lane.b32.xlu1 %v40_v47, %s934_s19  ;;  %804 = vrot.lane.b32.xlu0 %v803_v12, %s934_s19 }
  0x5c   :  { %45 = vrot.lane.b32.xlu0 %v39_v18, %s934_s19 }
  0x5f   :  { %v260_v48 = vpop.permute.xlu2 %259 }
  0x60   :  { %v276_v50 = vmul.f32 %v260_v48, %v1003_v29 }
  0x62   :  { %474 = vrot.lane.b32.xlu1 %v276_v50, %s935_s22 }
  0x67   :  { %v262_v51 = vpop.permute.xlu2 %261 }
  0x68   :  { %v268_v52 = vsel %vm267_vm0, %v260_v48, %v262_v51 }
  0x69   :  { %v277_v53 = vmul.f32 %v268_v52, %v1005_v30 }
  0x6b   :  { %476 = vrot.lane.b32.xlu1 %v277_v53, %s935_s22 }
  0x6f   :  { %v1043_v61 = vpop.permute.xlu2 %172 }
  0x70   :  { %v189_v10 = vmul.f32 %v1043_v61, %v1003_v29 }
  0x76   :  { %v235_v54 = vpop.permute.xlu1 %234  ;;  %v1036_v55 = vpop.permute.xlu0 %230 }
  0x77   :  { %v179_v11 = vpop.permute.xlu2 %178 }
  0x78   :  { %v193_v31 = vmul.f32 0.0, %v179_v11 }
  0x7a   :  { %v393_v36 = vrot.slane %v193_v31, 4 }
  0x7e   :  { %v237_v57 = vpop.permute.xlu1 %236  ;;  %v233_v58 = vpop.permute.xlu0 %232 }
  0x7f   :  { %v239_v59 = vsel %vm238_vm1, %v1036_v55, %v233_v58  ;;  %v240_v60 = vsel %vm238_vm1, %v233_v58, %v235_v54  ;;  %v206_v19 = vpop.permute.xlu2 %205  ;;  %v241_v20 = vsel %vm238_vm1, %v235_v54, %v237_v57  ;;  %v251_v26 = vmul.f32 0.0, %v237_v57 }
  0x80   :  { %v248_v62 = vmul.f32 %v239_v59, %v1005_v30  ;;  %v249_v63 = vmul.f32 %v240_v60, %v1038_v56  ;;  %v250_v25 = vmul.f32 %v241_v20, %v1015_v41 }
  0x81   :  { %v448_v35 = vrot.slane %v251_v26, 4 }
  0x82   :  { %v445_v0 = vrot.slane %v248_v62, 4  ;;  %v446_v1 = vrot.slane %v249_v63, 4  ;;  %v447_v34 = vrot.slane %v250_v25, 4 }
  0x84   :  { %v1047_v2 = vpack.i.bf16 %v446_v1, %v445_v0  ;;  %v843_v45 = vpack.i.bf16 %v448_v35, %v447_v34  ;;  %v247_v0 = vmul.f32 %v1036_v55, %v1003_v29 }
  0x86   :  { %v266_v5 = vpop.permute.xlu1 %265  ;;  %v264_v6 = vpop.permute.xlu0 %263  ;;  %v444_v4 = vrot.slane %v247_v0, 4 }
  0x87   :  { %v280_v7 = vmul.f32 0.0, %v266_v5  ;;  %v1050_v8 = vsel %vm267_vm0, %v264_v6, %v266_v5  ;;  %v269_v13 = vsel %vm267_vm0, %v262_v51, %v264_v6  ;;  %v133_v38 = vpop.permute.xlu2 %132 }
  0x88   :  { %v278_v16 = vmul.f32 %v269_v13, %v1038_v56  ;;  %v279_v35 = vmul.f32 %v1050_v8, %v1015_v41 }
  0x89   :  { %482 = vrot.lane.b32.xlu2 %v280_v7, %s935_s22 }
  0x8e   :  { %v1057_v14 = vpop.permute.xlu1 %176  ;;  %v1059_v15 = vpop.permute.xlu0 %174 }
  0x8f   :  { %v183_v17 = vsel %vm180_vm2, %v1057_v14, %v179_v11  ;;  %v75_v57 = vpop.permute.xlu2 %74 }
  0x90   :  { %v192_v32 = vmul.f32 %v183_v17, %v1015_v41 }
  0x91   :  { %478 = vrot.lane.b32.xlu2 %v278_v16, %s935_s22  ;;  %v389_v16 = vrot.slane %v189_v10, 4 }
  0x92   :  { %v392_v37 = vrot.slane %v192_v32, 4 }
  0x94   :  { %v1081_v48 = vpack.i.bf16 %v393_v36, %v392_v37 }
  0x96   :  { %v204_v21 = vpop.permute.xlu1 %203  ;;  %v1068_v22 = vpop.permute.xlu0 %201 }
  0x97   :  { %v211_v23 = vsel %vm209_vm3, %v204_v21, %v206_v19  ;;  %v210_v24 = vsel %vm209_vm3, %v1068_v22, %v204_v21  ;;  %v104_v1 = vpop.permute.xlu2 %103  ;;  %v181_v21 = vsel %vm180_vm2, %v1043_v61, %v1059_v15 }
  0x98   :  { %v220_v27 = vmul.f32 %v211_v23, %v1038_v56  ;;  %v219_v28 = vmul.f32 %v210_v24, %v1005_v30  ;;  %v182_v23 = vsel %vm180_vm2, %v1059_v15, %v1057_v14 }
  0x99   :  { %v191_v31 = vmul.f32 %v182_v23, %v1038_v56 }
  0x9a   :  { %v818_v33 = vpack.i.bf16 %v220_v27, %v219_v28  ;;  %v190_v28 = vmul.f32 %v181_v21, %v1005_v30 }
  0x9b   :  { %v391_v34 = vrot.slane %v191_v31, 4 }
  0x9c   :  { %819 = vrot.lane.b32.xlu1 %v818_v33, %s936_s2  ;;  %v390_v61 = vrot.slane %v190_v28, 4 }
  0x9e   :  { %v208_v39 = vpop.permute.xlu0 %207  ;;  %v131_v40 = vpop.permute.xlu1 %130 }
  0x9f   :  { %v212_v42 = vsel %vm209_vm3, %v206_v19, %v208_v39  ;;  %v222_v43 = vmul.f32 0.0, %v208_v39  ;;  %v138_v47 = vsel %vm136_vm4, %v131_v40, %v133_v38  ;;  %v71_v8 = vpop.permute.xlu2 %70 }
  0xa0   :  { %v221_v44 = vmul.f32 %v212_v42, %v1015_v41  ;;  %v147_v50 = vmul.f32 %v138_v47, %v1005_v30 }
  0xa2   :  { %v823_v49 = vpack.i.bf16 %v222_v43, %v221_v44  ;;  %v342_v54 = vrot.slane %v147_v50, 4  ;;  %v37_v43 = vperm.slane %v1025_v46, 0  ;;  %v87_v46 = vmul.f32 0.0, %v71_v8 }
  0xa4   :  { %824 = vrot.lane.b32.xlu2 %v823_v49, %s936_s2  ;;  %844 = vrot.lane.b32.xlu1 %v843_v45, %s937_s24 }
  0xa6   :  { %v135_v51 = vpop.permute.xlu0 %134  ;;  %v1086_v52 = vpop.permute.xlu1 %72 }
  0xa7   :  { %v139_v53 = vsel %vm136_vm4, %v133_v38, %v135_v51  ;;  %v149_v17 = vmul.f32 %v135_v51, %v1015_v41  ;;  %v80_v14 = vsel %vm78_vm6, %v1086_v52, %v75_v57  ;;  %v848_v38 = vpack.i.bf16 %v391_v34, %v390_v61 }
  0xa8   :  { %v148_v58 = vmul.f32 %v139_v53, %v1038_v56  ;;  %v89_v36 = vmul.f32 %v80_v14, %v1005_v30  ;;  %v79_v44 = vsel %vm78_vm6, %v71_v8, %v1086_v52  ;;  %v286_v52 = vrot.slane %v87_v46, 4 }
  0xa9   :  { %v344_v26 = vrot.slane %v149_v17, 4  ;;  %v88_v47 = vmul.f32 %v79_v44, %v1003_v29 }
  0xaa   :  { %v343_v59 = vrot.slane %v148_v58, 4  ;;  %v288_v39 = vrot.slane %v89_v36, 4 }
  0xab   :  { %v287_v50 = vrot.slane %v88_v47, 4 }
  0xac   :  { %v858_v60 = vpack.i.bf16 %v343_v59, %v342_v54  ;;  %v1152_v54 = vpop.permute.xlu2 %43 }
  0xae   :  { %v1090_v62 = vpop.permute.xlu0 %76  ;;  %v1092_v63 = vpop.permute.xlu1 %101  ;;  %859 = vrot.lane.b32.xlu1 %v858_v60, %s932_s14 }
  0xaf   :  { %v109_v3 = vsel %vm107_vm5, %v1092_v63, %v104_v1  ;;  %v81_v15 = vsel %vm78_vm6, %v75_v57, %v1090_v62  ;;  %v91_v49 = vmul.f32 %v1090_v62, %v1015_v41 }
  0xb0   :  { %v118_v5 = vmul.f32 %v109_v3, %v1005_v30  ;;  %v90_v37 = vmul.f32 %v81_v15, %v1038_v56 }
  0xb1   :  { %v290_v51 = vrot.slane %v91_v49, 4 }
  0xb6   :  { %v106_v6 = vpop.permute.xlu0 %105  ;;  %449 = vrot.lane.b32.xlu1 %v444_v4, %s937_s24  ;;  %v129_v9 = vpop.permute.xlu1 %128 }
  0xb7   :  { %v110_v7 = vsel %vm107_vm5, %v104_v1, %v106_v6  ;;  %v145_v55 = vmul.f32 0.0, %v129_v9  ;;  %v137_v13 = vsel %vm136_vm4, %v129_v9, %v131_v40  ;;  %v120_v24 = vmul.f32 %v106_v6, %v1015_v41 }
  0xb8   :  { %v119_v11 = vmul.f32 %v110_v7, %v1038_v56  ;;  %v146_v18 = vmul.f32 %v137_v13, %v1003_v29  ;;  %v289_v40 = vrot.slane %v90_v37, 4 }
  0xb9   :  { %v340_v19 = vrot.slane %v145_v55, 4 }
  0xba   :  { %v828_v12 = vpack.i.bf16 %v119_v11, %v118_v5  ;;  %v341_v32 = vrot.slane %v146_v18, 4  ;;  %v863_v42 = vpack.i.bf16 %v289_v40, %v288_v39 }
  0xbb   :  { %v833_v33 = vpack.i.bf16 %v340_v19, %v344_v26 }
  0xbc   :  { %829 = vrot.lane.b32.xlu2 %v828_v12, %s938_s25 }
  0xbe   :  { %v100_v20 = vpop.permute.xlu0 %99  ;;  %394 = vrot.lane.b32.xlu1 %v389_v16, %s939_s26  ;;  %v1138_v45 = vpop.permute.xlu1 %809 }
  0xbf   :  { %v116_v25 = vmul.f32 0.0, %v100_v20  ;;  %v812_v13 = vunpack.i.h.bf16 %v1138_v45 }
  0xc1   :  { %v813_v27 = vpack.i.bf16 %v116_v25, %v120_v24 }
  0xc3   :  { %814 = vrot.lane.b32.xlu0 %v813_v27, %s938_s25 }
  0xc4   :  { %834 = vrot.lane.b32.xlu2 %v833_v33, %s932_s14 }
  0xc6   :  { %347 = vrot.lane.b32.xlu1 %v341_v32, %s932_s14  ;;  %v1150_v53 = vpop.permute.xlu1 %47  ;;  %v1169_v6 = vpop.permute.xlu0 %804 }
  0xc7   :  { %v807_v49 = vunpack.i.h.bf16 %v1169_v6  ;;  %v806_v46 = vunpack.i.l.bf16 %v1169_v6 }
  0xcb   :  { %480 = vrot.lane.b32.xlu0 %v279_v35, %s935_s22 }
  0xcc   :  { %849 = vrot.lane.b32.xlu2 %v848_v38, %s939_s26 }
  0xce   :  { %v1175_v10 = vpop.permute.xlu0 %45 }
  0xd3   :  { %839 = vrot.lane.b32.xlu0 %v1047_v2, %s937_s24  ;;  %v218_v2 = vmul.f32 %v1068_v22, %v1003_v29  ;;  %v108_v22 = vsel %vm107_vm5, %v100_v20, %v1092_v63 }
  0xd4   :  { %864 = vrot.lane.b32.xlu2 %v863_v42, %s931_s7  ;;  %v475_v57 = vpop.permute.xlu1 %474  ;;  %v117_v58 = vmul.f32 %v108_v22, %v1003_v29 }
  0xdb   :  { %854 = vrot.lane.b32.xlu0 %v1081_v48, %s939_s26  ;;  %v868_v48 = vpack.i.bf16 %v286_v52, %v290_v51 }
  0xdc   :  { %41 = vrot.lane.b32.xlu2 %v37_v43, %s934_s19 }
  0xdd   :  { %v477_v60 = vpop.permute.xlu1 %476 }
  0xde   :  { %v485_v62 = vsel %vm484_vm7, %v475_v57, %v477_v60 }
  0xe3   :  { %419 = vrot.lane.b32.xlu0 %v218_v2, %s936_s2  ;;  %v483_v59 = vpop.permute.xlu2 %482 }
  0xe4   :  { %293 = vrot.lane.b32.xlu2 %v287_v50, %s931_s7  ;;  %v811_v50 = vunpack.i.l.bf16 %v1138_v45 }
  0xeb   :  { %869 = vrot.lane.b32.xlu0 %v868_v48, %s931_s7  ;;  %v479_v0 = vpop.permute.xlu2 %478  ;;  %v377_v48 = vsel %vm49_vm13, %v806_v46, %v807_v49 }
  0xec   :  { %v486_v1 = vsel %vm484_vm7, %v477_v60, %v479_v0 }
  0xf3   :  { %317 = vrot.lane.b32.xlu0 %v117_v58, %s938_s25 }
  0xfb   :  { %571 = vrot.lane.b32.xlu0 %v475_v57, %s928_s23 }
  0xfe   :  { %v1165_v4 = vpop.permute.xlu2 %824 }
  0xff   :  { %v826_v28 = vunpack.i.l.bf16 %v1165_v4  ;;  %v827_v51 = vunpack.i.h.bf16 %v1165_v4 }
 0x103   :  { %575 = vrot.lane.b32.xlu0 %v486_v1, %s928_s23  ;;  %v378_v1 = vsel %vm49_vm13, %v807_v49, %v811_v50 }
 0x10e   :  { %v1163_v3 = vpop.permute.xlu1 %819 }
 0x10f   :  { %v822_v26 = vunpack.i.h.bf16 %v1163_v3  ;;  %v821_v27 = vunpack.i.l.bf16 %v1163_v3 }
 0x111   :  { %v432_v34 = vsel %vm429_vm9, %v822_v26, %v826_v28  ;;  %v431_v14 = vsel %vm429_vm9, %v821_v27, %v822_v26 }
 0x116   :  { %v845_v63 = vpop.permute.xlu1 %844  ;;  %v1171_v7 = vpop.permute.xlu2 %829 }
 0x117   :  { %v846_v32 = vunpack.i.l.bf16 %v845_v63  ;;  %v847_v39 = vunpack.i.h.bf16 %v845_v63  ;;  %v832_v40 = vunpack.i.h.bf16 %v1171_v7  ;;  %v831_v8 = vunpack.i.l.bf16 %v1171_v7 }
 0x119   :  { %v463_v57 = vsel %vm459_vm10, %v846_v32, %v847_v39  ;;  %v328_v58 = vsel %vm325_vm11, %v831_v8, %v832_v40  ;;  %v52_v39 = vsel %vm49_vm13, %v1175_v10, %v1150_v53 }
 0x11e   :  { %v1177_v11 = vpop.permute.xlu2 %834 }
 0x11f   :  { %v836_v16 = vunpack.i.l.bf16 %v1177_v11 }
 0x120   :  { %v1167_v5 = vpop.permute.xlu1 %859 }
 0x121   :  { %v862_v35 = vunpack.i.h.bf16 %v1167_v5  ;;  %v861_v36 = vunpack.i.l.bf16 %v1167_v5 }
 0x123   :  { %v357_v52 = vsel %vm78_vm6, %v861_v36, %v862_v35 }
 0x126   :  { %v1196_v21 = vpop.permute.xlu2 %849 }
 0x127   :  { %v852_v44 = vunpack.i.h.bf16 %v1196_v21  ;;  %v851_v47 = vunpack.i.l.bf16 %v1196_v21 }
 0x128   :  { %v1173_v9 = vpop.permute.xlu1 %449 }
 0x129   :  { %v406_v60 = vsel %vm404_vm12, %v851_v47, %v852_v44 }
 0x12a   :  { %v502_v6 = vsel %vm489_vm8, %v377_v48, %v406_v60 }
 0x12e   :  { %v1207_v15 = vpop.permute.xlu2 %864 }
 0x130   :  { %v1179_v55 = vpop.permute.xlu1 %394 }
 0x131   :  { %v500_v18 = vsel %vm489_vm8, %v812_v13, %v1179_v55 }
 0x135   :  { %v1181_v12 = vpop.permute.xlu0 %814 }
 0x136   :  { %v816_v17 = vunpack.i.l.bf16 %v1181_v12  ;;  %v42_v4 = vpop.permute.xlu2 %41 }
 0x138   :  { %v499_v19 = vsel %vm489_vm8, %v816_v17, %v836_v16 }
 0x139   :  { %v873_v20 = vpack.i.bf16 %v500_v18, %v499_v19 }
 0x13b   :  { %874 = vrot.lane.b32.xlu2 %v873_v20, %s928_s23 }
 0x13d   :  { %v481_v23 = vpop.permute.xlu0 %480 }
 0x13e   :  { %v488_v24 = vsel %vm484_vm7, %v481_v23, %v483_v59  ;;  %v487_v25 = vsel %vm484_vm7, %v479_v0, %v481_v23  ;;  %v433_v0 = vsel %vm429_vm9, %v826_v28, %v827_v51 }
 0x13f   :  { %579 = vrot.lane.b32.xlu0 %v488_v24, %s928_s23  ;;  %577 = vrot.lane.b32.xlu1 %v487_v25, %s928_s23  ;;  %v509_v19 = vsel %vm489_vm8, %v433_v0, %v463_v57  ;;  %v329_v25 = vsel %vm325_vm11, %v832_v40, %v816_v17  ;;  %v866_v17 = vunpack.i.l.bf16 %v1207_v15  ;;  %v817_v57 = vunpack.i.h.bf16 %v1181_v12 }
 0x145   :  { %v840_v31 = vpop.permute.xlu0 %839 }
 0x146   :  { %v842_v33 = vunpack.i.h.bf16 %v840_v31  ;;  %v841_v61 = vunpack.i.l.bf16 %v840_v31 }
 0x147   :  { %573 = vrot.lane.b32.xlu1 %v485_v62, %s928_s23  ;;  %v497_v62 = vsel %vm489_vm8, %v328_v58, %v357_v52 }
 0x148   :  { %v462_v37 = vsel %vm459_vm10, %v842_v33, %v846_v32  ;;  %v461_v38 = vsel %vm459_vm10, %v841_v61, %v842_v33  ;;  %v888_v21 = vpack.i.bf16 %v497_v62, %v509_v19  ;;  %v460_v28 = vsel %vm459_vm10, %v1173_v9, %v841_v61 }
 0x149   :  { %v507_v42 = vsel %vm489_vm8, %v431_v14, %v461_v38  ;;  %v508_v43 = vsel %vm489_vm8, %v432_v34, %v462_v37  ;;  %v358_v34 = vsel %vm78_vm6, %v862_v35, %v836_v16  ;;  %v867_v37 = vunpack.i.h.bf16 %v1207_v15  ;;  %v294_v38 = vpop.permute.xlu2 %293 }
 0x14a   :  { %v878_v2 = vpack.i.bf16 %v508_v43, %v507_v42  ;;  %v405_v16 = vsel %vm404_vm12, %v1179_v55, %v851_v47  ;;  %v50_v15 = vsel %vm49_vm13, %v42_v4, %v1152_v54  ;;  %v62_v35 = vmul.f32 %v1150_v53, %v1015_v41 }
 0x14b   :  { %v303_v40 = vsel %vm136_vm4, %v866_v17, %v867_v37  ;;  %v376_v42 = vsel %vm49_vm13, %v812_v13, %v806_v46  ;;  %v58_v43 = vmul.f32 0.0, %v42_v4  ;;  %v302_v55 = vsel %vm136_vm4, %v294_v38, %v866_v17 }
 0x14c   :  { %879 = vrot.lane.b32.xlu2 %v878_v2, %s928_s23  ;;  %v501_v49 = vsel %vm489_vm8, %v376_v42, %v405_v16  ;;  %v59_v41 = vmul.f32 %v50_v15, %v1003_v29  ;;  %v837_v29 = vunpack.i.h.bf16 %v1177_v11 }
 0x14d   :  { %v855_v22 = vpop.permute.xlu0 %854 }
 0x14e   :  { %v856_v59 = vunpack.i.l.bf16 %v855_v22  ;;  %v857_v3 = vunpack.i.h.bf16 %v855_v22  ;;  %v348_v22 = vpop.permute.xlu1 %347 }
 0x14f   :  { %v356_v60 = vsel %vm78_vm6, %v348_v22, %v861_v36 }
 0x150   :  { %v407_v63 = vsel %vm404_vm12, %v852_v44, %v856_v59  ;;  %v408_v23 = vsel %vm404_vm12, %v856_v59, %v857_v3  ;;  %v355_v59 = vsel %vm78_vm6, %v837_v29, %v348_v22 }
 0x151   :  { %v503_v18 = vsel %vm489_vm8, %v378_v1, %v407_v63  ;;  %v504_v33 = vsel %vm489_vm8, %v811_v50, %v408_v23 }
 0x152   :  { %v883_v20 = vpack.i.bf16 %v503_v18, %v502_v6 }
 0x154   :  { %884 = vrot.lane.b32.xlu1 %v883_v20, %s928_s23  ;;  %889 = vrot.lane.b32.xlu2 %v888_v21, %s928_s23 }
 0x155   :  { %v420_v24 = vpop.permute.xlu0 %419 }
 0x156   :  { %v430_v26 = vsel %vm429_vm9, %v420_v24, %v821_v27  ;;  %v505_v31 = vsel %vm489_vm8, %v420_v24, %v1173_v9  ;;  %v498_v27 = vsel %vm489_vm8, %v329_v25, %v358_v34  ;;  %v51_v9 = vsel %vm49_vm13, %v1152_v54, %v1175_v10 }
 0x157   :  { %v506_v32 = vsel %vm489_vm8, %v430_v26, %v460_v28  ;;  %v893_v61 = vpack.i.bf16 %v504_v33, %v498_v27  ;;  %v60_v10 = vmul.f32 %v51_v9, %v1005_v30  ;;  %v61_v54 = vmul.f32 %v52_v39, %v1038_v56 }
 0x158   :  { %v898_v14 = vpack.i.bf16 %v506_v32, %v505_v31  ;;  %v491_v30 = vsel %vm489_vm8, %v59_v41, %v302_v55 }
 0x159   :  { %v492_v46 = vsel %vm489_vm8, %v60_v10, %v303_v40 }
 0x15a   :  { %899 = vrot.lane.b32.xlu0 %v898_v14, %s928_s23 }
 0x15c   :  { %894 = vrot.lane.b32.xlu2 %v893_v61, %s928_s23 }
 0x15d   :  { %v870_v44 = vpop.permute.xlu0 %869 }
 0x15e   :  { %v872_v47 = vunpack.i.h.bf16 %v870_v44  ;;  %v871_v2 = vunpack.i.l.bf16 %v870_v44 }
 0x160   :  { %v301_v53 = vsel %vm136_vm4, %v872_v47, %v294_v38  ;;  %v304_v45 = vsel %vm136_vm4, %v867_v37, %v871_v2  ;;  %v494_v13 = vsel %vm489_vm8, %v62_v35, %v871_v2 }
 0x161   :  { %v908_v50 = vpack.i.bf16 %v494_v13, %v501_v49  ;;  %v493_v51 = vsel %vm489_vm8, %v61_v54, %v304_v45  ;;  %v490_v52 = vsel %vm489_vm8, %v58_v43, %v301_v53  ;;  %v510_v53 = vld [vmem:[%s1361_s1] sm:$0xff] }
 0x162   :  { %v903_v56 = vpack.i.bf16 %v493_v51, %v492_v46  ;;  %v918_v48 = vpack.i.bf16 %v491_v30, %v490_v52 }
 0x163   :  { %909 = vrot.lane.b32.xlu0 %v908_v50, %s928_s23 }
 0x164   :  { %904 = vrot.lane.b32.xlu1 %v903_v56, %s928_s23  ;;  %919 = vrot.lane.b32.xlu2 %v918_v48, %s928_s23 }
 0x165   :  { %v318_v58 = vpop.permute.xlu0 %317 }
 0x166   :  { %v326_v62 = vsel %vm325_vm11, %v817_v57, %v318_v58  ;;  %v327_v0 = vsel %vm325_vm11, %v318_v58, %v831_v8 }
 0x167   :  { %v495_v11 = vsel %vm489_vm8, %v326_v62, %v355_v59  ;;  %v496_v12 = vsel %vm489_vm8, %v327_v0, %v356_v60 }
 0x168   :  { %v913_v1 = vpack.i.bf16 %v496_v12, %v495_v11 }
 0x16c   :  { %914 = vrot.lane.b32.xlu1 %v913_v1, %s928_s23 }
 0x16d   :  { %v572_v63 = vpop.permute.xlu0 %571 }
 0x175   :  { %v576_v6 = vpop.permute.xlu0 %575 }
 0x195   :  { %v875_v3 = vpop.permute.xlu2 %874 }
 0x196   :  { %v876_v17 = vunpack.i.l.bf16 %v875_v3  ;;  %v877_v44 = vunpack.i.h.bf16 %v875_v3 }
 0x1a6   :  { %v880_v4 = vpop.permute.xlu2 %879 }
 0x1a7   :  { %v882_v36 = vunpack.i.h.bf16 %v880_v4  ;;  %v881_v18 = vunpack.i.l.bf16 %v880_v4 }
 0x1a9   :  { %v595_v23 = vsel %vm267_vm0, %v881_v18, %v882_v36 }
 0x1ae   :  { %v1306_v5 = vpop.permute.xlu2 %889 }
 0x1af   :  { %v891_v19 = vunpack.i.l.bf16 %v1306_v5  ;;  %v892_v27 = vunpack.i.h.bf16 %v1306_v5 }
 0x1b1   :  { %v580_v7 = vpop.permute.xlu0 %579  ;;  %v578_v20 = vpop.permute.xlu1 %577  ;;  %v596_v24 = vsel %vm267_vm0, %v882_v36, %v891_v19 }
 0x1b2   :  { %v599_v8 = vsel %vm267_vm0, %v576_v6, %v578_v20  ;;  %v600_v21 = vsel %vm267_vm0, %v578_v20, %v580_v7 }
 0x1b3   :  { %783 = vmatpush.msk.msra.mxu2 %vm489_vm8, %v599_v8  ;;  %785 = vmatpush.msk.msra.mxu3 %vm489_vm8, %v600_v21 }
 0x1b5   :  { %681 = vmatpush.msra.mxu2 %v595_v23  ;;  %701 = vmatpush.msra.mxu3 %v596_v24 }
 0x1b6   :  { %v895_v31 = vpop.permute.xlu2 %894 }
 0x1b7   :  { %v897_v33 = vunpack.i.h.bf16 %v895_v31  ;;  %v896_v34 = vunpack.i.l.bf16 %v895_v31 }
 0x1b9   :  { %v574_v25 = vpop.permute.xlu1 %573  ;;  %v587_v38 = vsel %vm267_vm0, %v892_v27, %v896_v34  ;;  %v588_v39 = vsel %vm267_vm0, %v896_v34, %v876_v17  ;;  %v738_v34 = vld [vmem:[%s1362_s3] sm:$0xff] }
 0x1ba   :  { %v597_v26 = vsel %vm267_vm0, %v572_v63, %v574_v25  ;;  %v598_v28 = vsel %vm267_vm0, %v574_v25, %v576_v6 }
 0x1bb   :  { %779 = vmatpush.msk.msra.mxu0 %vm489_vm8, %v597_v26  ;;  %781 = vmatpush.msk.msra.mxu1 %vm489_vm8, %v598_v28 }
 0x1be   :  { %v920_v46 = vpop.permute.xlu2 %919 }
 0x1bf   :  { %v922_v50 = vunpack.i.h.bf16 %v920_v46  ;;  %v921_v51 = vunpack.i.l.bf16 %v920_v46 }
 0x1c1   :  { %v581_v29 = vsel %vm267_vm0, %v921_v51, %v922_v50 }
 0x1c6   :  { %v885_v32 = vpop.permute.xlu1 %884 }
 0x1c7   :  { %v887_v14 = vunpack.i.h.bf16 %v885_v32  ;;  %v886_v37 = vunpack.i.l.bf16 %v885_v32 }
 0x1c9   :  { %v591_v61 = vsel %vm267_vm0, %v886_v37, %v887_v14  ;;  %v592_v9 = vsel %vm267_vm0, %v887_v14, %v897_v33 }
 0x1ca   :  { %682 = vmatpush.msra.mxu2 %v591_v61  ;;  %702 = vmatpush.msra.mxu3 %v592_v9 }
 0x1cc   :  { %v900_v16 = vpop.permute.xlu0 %899  ;;  %683 = vmatpush.msra.mxu2 %v587_v38  ;;  %703 = vmatpush.msra.mxu3 %v588_v39 }
 0x1cd   :  { %v902_v15 = vunpack.i.h.bf16 %v900_v16  ;;  %v901_v35 = vunpack.i.l.bf16 %v900_v16 }
 0x1cf   :  { %v593_v40 = vsel %vm267_vm0, %v901_v35, %v902_v15  ;;  %v594_v42 = vsel %vm267_vm0, %v902_v15, %v881_v18  ;;  %v940_v18 = vmov 0  }
 0x1d0   :  { %641 = vmatpush.msra.mxu0 %v593_v40  ;;  %661 = vmatpush.msra.mxu1 %v594_v42 }
 0x1d1   :  { %923 = vset.pattern.permute.xlu2 %v940_v18  ;;  %924 = vset.pattern.permute.xlu0 %v940_v18 }
 0x1d5   :  { %v910_v43 = vpop.permute.xlu0 %909 }
 0x1d6   :  { %v912_v10 = vunpack.i.h.bf16 %v910_v43  ;;  %v911_v55 = vunpack.i.l.bf16 %v910_v43  ;;  %v905_v47 = vpop.permute.xlu1 %904 }
 0x1d7   :  { %v907_v2 = vunpack.i.h.bf16 %v905_v47  ;;  %v906_v54 = vunpack.i.l.bf16 %v905_v47 }
 0x1d8   :  { %v589_v49 = vsel %vm267_vm0, %v877_v44, %v911_v55  ;;  %v590_v41 = vsel %vm267_vm0, %v911_v55, %v886_v37 }
 0x1d9   :  { %642 = vmatpush.msra.mxu0 %v589_v49  ;;  %662 = vmatpush.msra.mxu1 %v590_v41  ;;  %v583_v45 = vsel %vm267_vm0, %v906_v54, %v907_v2  ;;  %v584_v13 = vsel %vm267_vm0, %v907_v2, %v912_v10  ;;  %v582_v57 = vsel %vm267_vm0, %v922_v50, %v906_v54 }
 0x1da   :  { %684 = vmatpush.msra.mxu2 %v583_v45  ;;  %704 = vmatpush.msra.mxu3 %v584_v13 }
 0x1db   :  { %784 = vmatmul.msk.f32.vlgmr.msra.gmra.mxu2 %vm617_vm14, %v510_v53  ;;  %786 = vmatmul.msk.f32.vlgmr.msra.gmra.mxu3 %vm617_vm14, %v510_v53 }
 0x1de   :  { %v915_v30 = vpop.permute.xlu1 %914 }
 0x1df   :  { %v917_v52 = vunpack.i.h.bf16 %v915_v30  ;;  %v916_v56 = vunpack.i.l.bf16 %v915_v30 }
 0x1e1   :  { %v585_v48 = vsel %vm267_vm0, %v916_v56, %v917_v52  ;;  %v586_v22 = vsel %vm267_vm0, %v917_v52, %v892_v27  ;;  %v740_v27 = vld [vmem:[%s1363_s4] sm:$0xff] }
 0x1e2   :  { %643 = vmatpush.msra.mxu0 %v585_v48  ;;  %663 = vmatpush.msra.mxu1 %v586_v22 }
 0x1e4   :  { %644 = vmatpush.msra.mxu0 %v581_v29  ;;  %664 = vmatpush.msra.mxu1 %v582_v57 }
 0x1e5   :  { %780 = vmatmul.msk.f32.vlgmr.msra.gmra.mxu0 %vm617_vm14, %v510_v53  ;;  %782 = vmatmul.msk.f32.vlgmr.msra.gmra.mxu1 %vm617_vm14, %v510_v53 }
 0x25e   :  { %v686_v58 = vpop.f32.mrf.mxu2  ;;  %v706_v59 = vpop.f32.mrf.mxu3 }
 0x25f   :  { %v716_v1 = vmul.f32 %v686_v58, %v686_v58  ;;  %v717_v4 = vmul.f32 %v706_v59, %v706_v59 }
 0x262   :  { %v646_v60 = vpop.f32.mrf.mxu0  ;;  %v666_v62 = vpop.f32.mrf.mxu1 }
 0x263   :  { %v714_v0 = vmul.f32 %v646_v60, %v646_v60  ;;  %v709_v11 = vadd.f32 %v666_v62, %v646_v60  ;;  %v715_v12 = vmul.f32 %v666_v62, %v666_v62 }
 0x265   :  { %v718_v3 = vadd.f32 %v715_v12, %v714_v0  ;;  %v710_v63 = vadd.f32 %v709_v11, %v686_v58 }
 0x267   :  { %v711_v6 = vadd.f32 %v710_v63, %v706_v59  ;;  %v719_v5 = vadd.f32 %v718_v3, %v716_v1 }
 0x269   :  { %712 = vadd.xlane.f32.xlu0 %v711_v6  ;;  %v720_v36 = vadd.f32 %v719_v5, %v717_v4 }
 0x26b   :  { %721 = vadd.xlane.f32.xlu1 %v720_v36 }
 0x2dc   :  { %v713_v19 = vpop.xlane.xlu0 %712 }
 0x2dd   :  { %v723_v7 = vmul.f32 0.001953125, %v713_v19 }
 0x2de   :  { %v722_v20 = vpop.xlane.xlu1 %721 }
 0x2df   :  { %v725_v8 = vmul.f32 %v723_v7, %v723_v7  ;;  %v724_v21 = vmul.f32 0.001953125, %v722_v20 }
 0x2e1   :  { %v726_v23 = vsub.f32 %v724_v21, %v725_v8 }
 0x2e3   :  { %v727_v24 = vadd.f32 1e-05, %v726_v23 }
 0x2e5   :  { %925 = vrsqrt.f32 %v727_v24  ;;  %vm734_vm0 = vweird.f32 %v727_v24 }
 0x2eb   :  { %v926_v25 = vpop.eup %925 }
 0x2ec   :  { %v729_v26 = vmul.f32 %v926_v25, %v727_v24  ;;  %vm735_vm15 = vweird.f32 %v926_v25 }
 0x2ed   :  { %vm736_vm1 = vmor %vm734_vm0, %vm735_vm15 }
 0x2ee   :  { %v730_v28 = vmul.f32 %v926_v25, %v729_v26 }
 0x2f0   :  { %v731_v31 = vmul.f32 0.5, %v730_v28 }
 0x2f2   :  { %v732_v32 = vsub.f32 1.5, %v731_v31 }
 0x2f4   :  { %v733_v33 = vmul.f32 %v926_v25, %v732_v32 }
 0x2f6   :  { %v737_v14 = vsel %vm736_vm1, %v926_v25, %v733_v33 }
 0x2f7   :  { %v739_v37 = vmul.f32 %v738_v34, %v737_v14 }
 0x2f9   :  { %745 = vperm.xlu2 %923, %v739_v37   ;;  %v741_v17 = vmul.f32 %v739_v37, %v723_v7 }
 0x2fb   :  { %v742_v61 = vsub.f32 %v740_v27, %v741_v17 }
 0x301   :  { %754 = vperm.xlu2 %923, %v742_v61  }
 0x353   :  { %v746_v9 = vpop.permute.xlu2 %745 }
 0x354   :  { %v748_v38 = vmul.f32 %v746_v9, %v646_v60  ;;  %v749_v39 = vmul.f32 %v746_v9, %v666_v62  ;;  %v750_v16 = vmul.f32 %v746_v9, %v686_v58  ;;  %v751_v15 = vmul.f32 %v746_v9, %v706_v59 }
 0x35b   :  { %v755_v35 = vpop.permute.xlu2 %754 }
 0x35c   :  { %v757_v40 = vadd.f32 %v755_v35, %v748_v38  ;;  %v758_v42 = vadd.f32 %v755_v35, %v749_v39  ;;  %v759_v43 = vadd.f32 %v755_v35, %v750_v16  ;;  %v760_v44 = vadd.f32 %v755_v35, %v751_v15 }
 0x35e   :  { %761 = vst [vmem:[%s1364_s5] sm:$0xff] %v757_v40 }
 0x35f   :  { %762 = vst [vmem:[%s1364_s5 + $0x8] sm:$0xff] %v758_v42 }
 0x360   :  { %787 = vst [vmem:[%s1364_s5 + $0x10] sm:$0xff] %v759_v43 }
 0x361   :  { %788 = vst [vmem:[%s1364_s5 + $0x18] sm:$0xff] %v760_v44 }

</bundles_post_ra>
